<compile_context>
chip_gen: v7x
topology: tpu7x:2x2x1
jax: 0.10.0
libtpu: 0.0.40
codegen_flags: <defaults>
</compile_context>

<pallas_src>
import numpy as np
import jax
import jax.numpy as jnp
from jax import lax
from jax.experimental import pallas as pl
from jax.experimental.pallas import tpu as pltpu

# ---------------------------------------------------------------------------
# Static module configuration (mirrors Edge_Attr.attr_dims).
# ---------------------------------------------------------------------------
ATTR_DIMS = [("importance", 0, 8, 5), ("oneway", 1, 2, 2),
             ("tunnel", 2, 2, 2), ("lanes", 3, 6, 3)]
EMB_ROWS = sum(d_in for _, _, d_in, _ in ATTR_DIMS)      # 18 embedding table rows
EMB_OUT_TOTAL = sum(d_out for _, _, _, d_out in ATTR_DIMS)   # 12
NUM_EDGE_DIM = 8
IN_FEATURES = EMB_OUT_TOTAL + NUM_EDGE_DIM + 1           # 21
OUT_FEATURES = 64
LEAKY_SLOPE = 0.01                                       # nn.LeakyReLU() default

# Packed-input lane layout (per paired row: even logical row then odd logical row).
PACK_LANES = 32
NUM_LANE0 = 0                 # lanes 0..15 : num_attr pair
Y_LANE0 = 16                  # lanes 16..17: y_init pair
CC_LANE0 = 18                 # lanes 18..25: cc pair (with per-column row offsets)
CONST_LANE = 26               # lane  26    : constant 1.0
ONEHOT_K = 64                 # one-hot / routed lanes fed to the folded weight
BIAS_HOT_LANE = 63            # always-hot lane that carries the Linear bias

# Per-cc-column offsets into the 36 one-hot lanes:
#   even row: importance->0, oneway->8, tunnel->10, lanes->12
#   odd  row: same + 18
_CC_ROW_OFFSETS = []
_off = 0
for _, _, _d_in, _ in ATTR_DIMS:
    _CC_ROW_OFFSETS.append(_off)
    _off += _d_in
CC_OFFSETS_PAIR = np.asarray(_CC_ROW_OFFSETS + [o + EMB_ROWS for o in _CC_ROW_OFFSETS],
                             np.float32)                 # [0,8,10,12, 18,26,28,30]


# ---------------------------------------------------------------------------
# Pallas kernel: one grid step handles rt = tm//2 paired rows (tm logical rows).
#   x_ref  : (rt, 32)  f32  packed input (see layout above)      -- one DMA
#   p_ref  : (32, 64)  f32  constant lane-permute / compare-base matrix
#   wh_ref : (64, 128) f32  folded embedding rows (block-diag) + bias row 63
#   wx_ref : (32, 128) f32  folded num/y weights (block-diag), zero on cc lanes
#   o_ref  : (rt, 128)      [even-row out(64) | odd-row out(64)]  lane-dense
# ---------------------------------------------------------------------------
def _edge_attr_kernel(x_ref, p_ref, wh_ref, wx_ref, o_ref):
    x = x_ref[...]                                                    # (rt, 32) f32
    # One-hot build: constant lane permute on the idle MXU + ONE compare.
    #   gathered[:, j] = cc_with_offset[col(j)] - j   for j < 36  (one-hot lanes)
    #                  = -1                           for 36 <= j < 63 (never hot)
    #                  =  0                           for j == 63 (always hot -> bias)
    gathered = jnp.dot(x, p_ref[...], preferred_element_type=jnp.float32)
    hot = (gathered == 0.0).astype(jnp.float32)                       # (rt, 64)
    # Fused Linear: folded embeddings + bias ride `hot`; num/y weights ride `x`.
    y = jnp.dot(hot, wh_ref[...], preferred_element_type=jnp.float32)
    y += jnp.dot(x, wx_ref[...], preferred_element_type=jnp.float32)
    y = jnp.maximum(y, LEAKY_SLOPE * y)                               # LeakyReLU(0.01)
    o_ref[...] = y.astype(o_ref.dtype)                                # bf16 by default


# ---------------------------------------------------------------------------
# Host-side parameter folding (done once per call; cheap, tiny matrices).
# ---------------------------------------------------------------------------
def _perm_matrix():
    """Constant (32, 64) matrix: routes cc lanes to their one-hot lanes and folds
    '- lane index' in via the constant-1 lane; column 63 stays all-zero so
    gathered[:, 63] == 0 always (the bias lane)."""
    P = np.zeros((PACK_LANES, ONEHOT_K), np.float32)
    j = 0
    for half in range(2):                                  # even / odd row of the pair
        for a, (_, _, d_in, _) in enumerate(ATTR_DIMS):
            P[CC_LANE0 + 4 * half + a, j:j + d_in] = 1.0
            j += d_in
    assert j == 2 * EMB_ROWS                               # 36 one-hot lanes
    P[CONST_LANE, 0:j] = -np.arange(j, dtype=np.float32)   # fold "- lane index"
    P[CONST_LANE, j:BIAS_HOT_LANE] = -1.0                  # never-hot filler lanes
    # P[CONST_LANE, BIAS_HOT_LANE] stays 0.0 -> always hot -> carries the bias row.
    return jnp.asarray(P)


def fold_params(params):
    W = params["w"]                                        # (21, 64)
    b = params["b"]                                        # (64,)
    parts, row = [], 0
    for name, _, _, d_out in ATTR_DIMS:
        parts.append(jnp.dot(params["emb_" + name], W[row:row + d_out],
                             precision=lax.Precision.HIGHEST))        # (d_in, 64)
        row += d_out
    w_cat = jnp.concatenate(parts, axis=0)                 # (18, 64) folded embeddings
    w_num = W[row:row + NUM_EDGE_DIM]                      # (8, 64)
    w_y = W[row + NUM_EDGE_DIM]                            # (64,)

    # One-hot-side weight (block-diagonal over even/odd halves) + bias row 63.
    w_hot = jnp.zeros((ONEHOT_K, 2 * OUT_FEATURES), jnp.float32)
    w_hot = w_hot.at[0:EMB_ROWS, 0:OUT_FEATURES].set(w_cat)
    w_hot = w_hot.at[EMB_ROWS:2 * EMB_ROWS, OUT_FEATURES:].set(w_cat)
    w_hot = w_hot.at[BIAS_HOT_LANE, 0:OUT_FEATURES].set(b)
    w_hot = w_hot.at[BIAS_HOT_LANE, OUT_FEATURES:].set(b)

    # Packed-input-side weight: rows index packed-input lanes; cc/const/pad rows = 0.
    w_x = jnp.zeros((PACK_LANES, 2 * OUT_FEATURES), jnp.float32)
    w_x = w_x.at[0:NUM_EDGE_DIM, 0:OUT_FEATURES].set(w_num)
    w_x = w_x.at[NUM_EDGE_DIM:2 * NUM_EDGE_DIM, OUT_FEATURES:].set(w_num)
    w_x = w_x.at[Y_LANE0, 0:OUT_FEATURES].set(w_y)
    w_x = w_x.at[Y_LANE0 + 1, OUT_FEATURES:].set(w_y)

    return _perm_matrix(), w_hot, w_x


# ---------------------------------------------------------------------------
# Tile selection (generation-gated per the review).
# ---------------------------------------------------------------------------
def _round_up(x, m):
    return ((x + m - 1) // m) * m


def _num_tc_per_chip():
    """Best-effort TensorCores-per-chip (v7x exposes 2; v5e/v6e expose 1)."""
    try:
        kind = jax.devices()[0].device_kind.lower()
    except Exception:
        return 1
    return 2 if "7" in kind else 1


def _choose_tm(M, tcs, tm_max=8192):
    # Largest multiple-of-16 logical-row tile such that the grid keeps >= 2 steps
    # per TensorCore (v5e/v6e: >= 2 total; v7x: >= 4), capped at tm_max for VMEM.
    min_steps = 2 * tcs
    return min(tm_max, max(16, _round_up(pl.cdiv(M, min_steps), 16)))


# ---------------------------------------------------------------------------
# Forward
# ---------------------------------------------------------------------------
def edge_attr_forward(params, num_attr, cc_attr, y_init, *,
                      tm=None, out_dtype=jnp.bfloat16):
    """num_attr: (B, N, 8) f32, cc_attr: (B, N, 4) int, y_init: (B, N, 1) f32
    returns: (B, N, 64) out_dtype (bf16 by default: halves HBM writeback)."""
    B, Nn, _ = num_attr.shape
    M = B * Nn
    p_mat, w_hot, w_x = fold_params(params)

    num = num_attr.reshape(M, NUM_EDGE_DIM).astype(jnp.float32)
    cc = cc_attr.reshape(M, 4).astype(jnp.int32)
    yi = y_init.reshape(M, 1).astype(jnp.float32)

    tcs = _num_tc_per_chip()
    if tm is None:
        tm = _choose_tm(M, tcs)
    assert tm % 16 == 0, "tm must be a multiple of 16 (paired rows, 8-sublane tiles)"
    steps = pl.cdiv(M, tm)
    if tcs > 1 and steps > 1 and steps % 2:
        steps += 1                       # keep both v7x TensorCores fed (even grid)
    Mp = steps * tm
    pad = Mp - M
    if pad:
        num = jnp.pad(num, ((0, pad), (0, 0)))
        cc = jnp.pad(cc, ((0, pad), (0, 0)))
        yi = jnp.pad(yi, ((0, pad), (0, 0)))

    # Single packed, lane-tight f32 input: one DMA + one lane-padded buffer per step.
    # TODO(synk): in the full GNN, fuse this packing into the producers of
    # num_attr / cc_attr / y_init so it does not cost a separate HBM pass.
    Mh = Mp // 2
    x2 = jnp.concatenate([
        num.reshape(Mh, 2 * NUM_EDGE_DIM),                               # lanes 0..15
        yi.reshape(Mh, 2),                                               # lanes 16..17
        cc.reshape(Mh, 8).astype(jnp.float32) + jnp.asarray(CC_OFFSETS_PAIR),  # 18..25
        jnp.ones((Mh, 1), jnp.float32),                                  # lane 26
        jnp.zeros((Mh, PACK_LANES - (CONST_LANE + 1)), jnp.float32),     # 27..31
    ], axis=1)

    rt = tm // 2
    out = pl.pallas_call(
        _edge_attr_kernel,
        out_shape=jax.ShapeDtypeStruct((Mh, 2 * OUT_FEATURES), out_dtype),
        grid=(steps,),
        in_specs=[
            pl.BlockSpec((rt, PACK_LANES), lambda i: (i, 0)),                # packed x
            pl.BlockSpec((PACK_LANES, ONEHOT_K), lambda i: (0, 0)),          # P
            pl.BlockSpec((ONEHOT_K, 2 * OUT_FEATURES), lambda i: (0, 0)),    # w_hot
            pl.BlockSpec((PACK_LANES, 2 * OUT_FEATURES), lambda i: (0, 0)),  # w_x
        ],
        out_specs=pl.BlockSpec((rt, 2 * OUT_FEATURES), lambda i: (i, 0)),
        compiler_params=pltpu.CompilerParams(
            dimension_semantics=("parallel",),
            vmem_limit_bytes=48 * 1024 * 1024),
    )(x2, p_mat, w_hot, w_x)

    out = out.reshape(Mp, OUT_FEATURES)[:M]
    return out.reshape(B, Nn, OUT_FEATURES)


# ---------------------------------------------------------------------------
# Init + pure-JAX reference (mirrors the PyTorch module).
# ---------------------------------------------------------------------------
def init_params(key):
    params = {}
    keys = jax.random.split(key, len(ATTR_DIMS) + 2)
    for k, (name, _, d_in, d_out) in zip(keys[:len(ATTR_DIMS)], ATTR_DIMS):
        params["emb_" + name] = jax.random.normal(k, (d_in, d_out), jnp.float32)
    bound = 1.0 / (IN_FEATURES ** 0.5)
    params["w"] = jax.random.uniform(keys[-2], (IN_FEATURES, OUT_FEATURES),
                                     jnp.float32, -bound, bound)
    params["b"] = jax.random.uniform(keys[-1], (OUT_FEATURES,),
                                     jnp.float32, -bound, bound)
    return params


def _reference(params, num_attr, cc_attr, y_init):
    em_list = []
    for name, i, _, _ in ATTR_DIMS:
        em_list.append(jnp.take(params["emb_" + name], cc_attr[:, :, i], axis=0))
    em_list.append(num_attr)
    em_list.append(y_init)
    feat = jnp.concatenate(em_list, axis=-1)
    y = jnp.dot(feat, params["w"], precision=lax.Precision.HIGHEST) + params["b"]
    return jnp.where(y >= 0, y, LEAKY_SLOPE * y)


if __name__ == "__main__":
    key = jax.random.PRNGKey(0)
    kp, k1, k2, k3 = jax.random.split(key, 4)
    params = init_params(kp)

    B, Nn = 2, 16
    num_attr = jax.random.normal(k1, (B, Nn, NUM_EDGE_DIM), jnp.float32)
    maxvals = jnp.array([d_in for _, _, d_in, _ in ATTR_DIMS], jnp.int32)   # [8,2,2,6]
    cc_attr = (jax.random.randint(k2, (B, Nn, 4), 0, 1 << 16) % maxvals).astype(jnp.int32)
    y_init = jax.random.normal(k3, (B, Nn, 1), jnp.float32)

    ref = _reference(params, num_attr, cc_attr, y_init)

    # Default (bf16 output): dtype-aware tolerance.
    out_bf = edge_attr_forward(params, num_attr, cc_attr, y_init)
    out_bf = jax.block_until_ready(out_bf)
    assert out_bf.shape == (B, Nn, OUT_FEATURES)
    assert out_bf.dtype == jnp.bfloat16
    assert jnp.allclose(out_bf.astype(jnp.float32), ref, atol=2.5e-2, rtol=2.5e-2)

    # f32 output path as a tighter sanity check.
    out_f32 = edge_attr_forward(params, num_attr, cc_attr, y_init,
                                out_dtype=jnp.float32)
    out_f32 = jax.block_until_ready(out_f32)
    assert jnp.allclose(out_f32, ref, atol=1e-2, rtol=1e-2)

    print("KERNEL_OK")
</pallas_src>

<mosaic_0001>
module attributes {stable_mosaic.version = 11 : i64} {
  func.func @_edge_attr_kernel(%arg0: i32, %arg1: memref<8x32xf32, #tpu.memory_space<vmem>>, %arg2: memref<32x64xf32, #tpu.memory_space<vmem>>, %arg3: memref<64x128xf32, #tpu.memory_space<vmem>>, %arg4: memref<32x128xf32, #tpu.memory_space<vmem>>, %arg5: memref<8x128xbf16, #tpu.memory_space<vmem>>) attributes {dimension_semantics = [#tpu.dimension_semantics<parallel>], iteration_bounds = array<i64: 2>, scalar_prefetch = 0 : i64, scratch_operands = 0 : i64, tpu.core_type = #tpu.core_type<tc>, window_params = [{transform_indices = @transform_0, window_bounds = array<i64: 8, 32>}, {pipeline_mode = #tpu.pipeline_mode<synchronous>, transform_indices = @transform_1, window_bounds = array<i64: 32, 64>}, {pipeline_mode = #tpu.pipeline_mode<synchronous>, transform_indices = @transform_2, window_bounds = array<i64: 64, 128>}, {pipeline_mode = #tpu.pipeline_mode<synchronous>, transform_indices = @transform_3, window_bounds = array<i64: 32, 128>}, {transform_indices = @transform_4, window_bounds = array<i64: 8, 128>}]} {
    %c0 = arith.constant 0 : index
    %c0_0 = arith.constant 0 : index
    %0 = vector.load %arg1[%c0, %c0_0] : memref<8x32xf32, #tpu.memory_space<vmem>>, vector<8x32xf32>
    %c0_1 = arith.constant 0 : index
    %c0_2 = arith.constant 0 : index
    %1 = vector.load %arg2[%c0_1, %c0_2] : memref<32x64xf32, #tpu.memory_space<vmem>>, vector<32x64xf32>
    %cst = arith.constant dense<0.000000e+00> : vector<8x64xf32>
    %2 = tpu.matmul %0, %1, %cst {dimension_numbers = #tpu.dot_dimension_numbers<[1], [0], [0], [1], [0, 0, 1, 1], [], []>} : vector<8x32xf32>, vector<32x64xf32>, vector<8x64xf32> -> vector<8x64xf32>
    %cst_3 = arith.constant 0.000000e+00 : f32
    %3 = vector.broadcast %cst_3 : f32 to vector<8x64xf32>
    %4 = arith.cmpf oeq, %2, %3 : vector<8x64xf32>
    %5 = arith.extui %4 : vector<8x64xi1> to vector<8x64xi32>
    %6 = arith.sitofp %5 : vector<8x64xi32> to vector<8x64xf32>
    %c0_4 = arith.constant 0 : index
    %c0_5 = arith.constant 0 : index
    %7 = vector.load %arg3[%c0_4, %c0_5] : memref<64x128xf32, #tpu.memory_space<vmem>>, vector<64x128xf32>
    %cst_6 = arith.constant dense<0.000000e+00> : vector<8x128xf32>
    %8 = tpu.matmul %6, %7, %cst_6 {dimension_numbers = #tpu.dot_dimension_numbers<[1], [0], [0], [1], [0, 0, 1, 1], [], []>} : vector<8x64xf32>, vector<64x128xf32>, vector<8x128xf32> -> vector<8x128xf32>
    %c0_7 = arith.constant 0 : index
    %c0_8 = arith.constant 0 : index
    %9 = vector.load %arg4[%c0_7, %c0_8] : memref<32x128xf32, #tpu.memory_space<vmem>>, vector<32x128xf32>
    %cst_9 = arith.constant dense<0.000000e+00> : vector<8x128xf32>
    %10 = tpu.matmul %0, %9, %cst_9 {dimension_numbers = #tpu.dot_dimension_numbers<[1], [0], [0], [1], [0, 0, 1, 1], [], []>} : vector<8x32xf32>, vector<32x128xf32>, vector<8x128xf32> -> vector<8x128xf32>
    %11 = arith.addf %8, %10 : vector<8x128xf32>
    %cst_10 = arith.constant 0.00999999977 : f32
    %12 = vector.broadcast %cst_10 : f32 to vector<8x128xf32>
    %13 = arith.mulf %12, %11 : vector<8x128xf32>
    %14 = arith.maximumf %11, %13 : vector<8x128xf32>
    %15 = arith.truncf %14 : vector<8x128xf32> to vector<8x128xbf16>
    %c0_11 = arith.constant 0 : index
    %c0_12 = arith.constant 0 : index
    %16 = vector.load %arg5[%c0_11, %c0_12] : memref<8x128xbf16, #tpu.memory_space<vmem>>, vector<8x128xbf16>
    tpu.vector_store %arg5[%c0_11, %c0_12], %15 {strides = array<i32>} : memref<8x128xbf16, #tpu.memory_space<vmem>>, vector<8x128xbf16>,
    return
  }
  func.func @transform_0(%arg0: i32) -> (i32, i32) {
    %c0_i32 = arith.constant 0 : i32
    %c0_i32_0 = arith.constant 0 : i32
    return %arg0, %c0_i32 : i32, i32
  }
  func.func @transform_1(%arg0: i32) -> (i32, i32) {
    %c0_i32 = arith.constant 0 : i32
    %c0_i32_0 = arith.constant 0 : i32
    %c0_i32_1 = arith.constant 0 : i32
    return %c0_i32, %c0_i32_0 : i32, i32
  }
  func.func @transform_2(%arg0: i32) -> (i32, i32) {
    %c0_i32 = arith.constant 0 : i32
    %c0_i32_0 = arith.constant 0 : i32
    %c0_i32_1 = arith.constant 0 : i32
    return %c0_i32, %c0_i32_0 : i32, i32
  }
  func.func @transform_3(%arg0: i32) -> (i32, i32) {
    %c0_i32 = arith.constant 0 : i32
    %c0_i32_0 = arith.constant 0 : i32
    %c0_i32_1 = arith.constant 0 : i32
    return %c0_i32, %c0_i32_0 : i32, i32
  }
  func.func @transform_4(%arg0: i32) -> (i32, i32) {
    %c0_i32 = arith.constant 0 : i32
    %c0_i32_0 = arith.constant 0 : i32
    return %arg0, %c0_i32 : i32, i32
  }
}

</mosaic_0001>

<bundles_post_ra>
// kernel: tpu_custom_call.1
= control target key start
LH: loop header
LB: loop body
LE: loop exit
PB: predicated region body
PF: predicated region fallthrough
CT: control target
= control target key end

     0   :  { %9 = vsyncpa [#allocation3], 0  ;;  %s1298_s0 = inlined_call_operand.hbm [shape: f32[16,32], index: 0, kind: input, shape index: {}]   ;;  %s1299_s1 = inlined_call_operand.hbm [shape: f32[32,64], index: 1, kind: input, shape index: {}]   ;;  %s1300_s2 = inlined_call_operand.hbm [shape: f32[64,128], index: 2, kind: input, shape index: {}]   ;;  %s1301_s3 = inlined_call_operand.hbm [shape: f32[32,128], index: 3, kind: input, shape index: {}]   ;;  %s1302_s4 = inlined_call_operand.hbm [shape: bf16[16,128], index: 4, kind: output, shape index: {}]  }
   0x1   :  { %11 = vsyncpa [#allocation3 + $0x1], 0 }
   0x2   :  { %12 = vsyncpa [#allocation6], 0 }
   0x3   :  { %13 = vsyncpa [#allocation9], 0 }
   0x4   :  { %14 = vsyncpa [#allocation4], 0 }
   0x5   :  { %16 = vsyncpa [#allocation4 + $0x1], 0  ;;  %s1026_s15 = smov 0   ;;  %s1028_s16 = smov 0  }
   0x6   :  { %s1030_s17 = smov 0   ;;  %s1032_s18 = smov 0  }
   0x7 LB: > { %s1047_s19 = sadd.s32 4294967295, %s989_s18   ;;  %s612_s20 = sadd.s32 4294967294, %s989_s18   ;;  %s989_s18 = sphi %s1032_s18, %s1325_s18   ;;  %s985_s17 = sphi %s1030_s17, %s1324_s17   ;;  %s981_s16 = sphi %s1028_s16, %s1323_s16   ;;  %s977_s15 = sphi %s1026_s15, %s1322_s15  }
   0x8   : > { %p42_p0 = scmp.ne.s32.totalorder %s981_s16, %s977_s15  ;;  %p1303_p1 = scmp.eq.s32.totalorder %s1047_s19, 0 }
   0x9   : > { %p135_p3 = scmp.eq.s32.totalorder %s612_s20, 1  ;;  %p613_p5 = scmp.ge.s32.totalorder %s989_s18, 1 }
   0xa   : > { %p1056_p4 = por %p1303_p1, %p42_p0  ;;  %p142_p7 = scmp.lt.s32.totalorder %s989_s18, 3 }
   0xb   : > { %p1061_p6 = por %p135_p3, %p42_p0  ;;  %s991_s24 = smov [#allocation5]  }
   0xc   : > { %s1306_s21 = scalar_select %p1056_p4, 1, 0 }
   0xd   : > { %s1307_s22 = scalar_select %p1061_p6, 1, 0 }
   0xe   : > { %p1066_p8 = pnand %p613_p5, %p142_p7  ;;  %s154_s25 = sshll.u32 %s991_s24, 4  ;;  %s1070_s25 = int_to_ptr.vmem [resolvable:$true] %s154_s25 }
   0xf   : > { %s992_s27 = smov [#allocation7]   ;;  %s993_s29 = smov [#allocation8]  }
  0x10   : > { %s1308_s23 = scalar_select %p1066_p8, 1, 0 }
  0x11   : > { %p735_p9 = pneg %p1066_p8  ;;  %s167_s28 = sshll.u32 %s992_s27, 4  ;;  %s1081_s28 = int_to_ptr.vmem [resolvable:$true] %s167_s28 }
  0x12   : > { %s1083_s30 = sshll.u32 %s993_s29, 4  ;;  %s801_s7 = scalar_lea.hbm %s1299_s1, 512  ;;  %s181_s30 = int_to_ptr.vmem [resolvable:$true] %s1083_s30 }
  0x13   : > { %p1077_p11 = pnand %p735_p9, %p1303_p1  ;;  %p802_p12 = scmp.ne.s32.totalorder %s1299_s1, %s801_s7 }
  0x14   : > { %p808_p5 = scmp.lt.u32.totalorder %s801_s7, %s1299_s1 }
  0x15   : > { %p1093_p13 = pneg %p1077_p11 }
  0x17   : > { %p804_p0 = pnand %p1093_p13, %p802_p12 }
  0x19   : > { %p805_p3 = pneg %p804_p0 }
  0x1b   : > { %p810_p7 = pnand %p808_p5, %p805_p3 }
  0x1d   : > { %813 = shalt.err (!%p810_p7)
}
  0x1e   : > { %s814_s13 = scalar_lea.vmem %s1070_s25, 512  ;;  %p822_p2 = scmp.lt.s32.totalorder %s1070_s25, %s1070_s25 }
  0x1f   : > { %p815_p9 = scmp.ne.s32.totalorder %s1070_s25, %s814_s13  ;;  %p823_p6 = scmp.lt.s32.totalorder %s814_s13, %s814_s13 }
  0x21   : > { %p817_p10 = pnand %p815_p9, %p1093_p13  ;;  %p824_p12 = por %p823_p6, %p822_p2 }
  0x23   : > { %p818_p1 = pneg %p817_p10 }
  0x25   : > { %p825_p0 = pnand %p824_p12, %p818_p1 }
  0x27   : > { %828 = shalt.err (!%p825_p0)
}
  0x28   : > { %s994_s14 = smov 128   ;;  %s995_s20 = smov 8  }
  0x29   : > { %738 = dma.hbm_to_vmem [thread:$0]  (!%p1077_p11), %s1299_s1, 512, %s1070_s25, [#allocation6], %s994_s14, %s994_s14, %s995_s20  }
  0x2a   : > { %s829_s6 = scalar_lea.hbm %s1300_s2, 1024 }
  0x2b   : > { %p830_p1 = scmp.ne.s32.totalorder %s1300_s2, %s829_s6  ;;  %p836_p10 = scmp.lt.u32.totalorder %s829_s6, %s1300_s2 }
  0x2d   : > { %p832_p2 = pnand %p830_p1, %p1093_p13 }
  0x2f   : > { %p833_p6 = pneg %p832_p2 }
  0x31   : > { %p838_p3 = pnand %p836_p10, %p833_p6 }
  0x33   : > { %841 = shalt.err (!%p838_p3)
}
  0x34   : > { %s842_s25 = scalar_lea.vmem %s1081_s28, 1024  ;;  %p850_p12 = scmp.lt.s32.totalorder %s1081_s28, %s1081_s28 }
  0x35   : > { %p843_p5 = scmp.ne.s32.totalorder %s1081_s28, %s842_s25  ;;  %p851_p0 = scmp.lt.s32.totalorder %s842_s25, %s842_s25 }
  0x37   : > { %p845_p7 = pnand %p843_p5, %p1093_p13  ;;  %p852_p1 = por %p851_p0, %p850_p12 }
  0x39   : > { %p846_p9 = pneg %p845_p7 }
  0x3b   : > { %p853_p2 = pnand %p852_p1, %p846_p9 }
  0x3d   : > { %856 = shalt.err (!%p853_p2)
}
  0x3e   : > { %741 = dma.hbm_to_vmem [thread:$0]  (!%p1077_p11), %s1300_s2, 1024, %s1081_s28, [#allocation6], %s994_s14, %s994_s14, %s995_s20  }
  0x3f   : > { %s857_s29 = scalar_lea.hbm %s1301_s3, 512 }
  0x40   : > { %p858_p6 = scmp.ne.s32.totalorder %s1301_s3, %s857_s29  ;;  %p864_p5 = scmp.lt.u32.totalorder %s857_s29, %s1301_s3 }
  0x42   : > { %p860_p10 = pnand %p858_p6, %p1093_p13 }
  0x44   : > { %p861_p3 = pneg %p860_p10 }
  0x46   : > { %p866_p7 = pnand %p864_p5, %p861_p3 }
  0x48   : > { %869 = shalt.err (!%p866_p7)
}
  0x49   : > { %s870_s9 = scalar_lea.vmem %s181_s30, 512  ;;  %p878_p1 = scmp.lt.s32.totalorder %s181_s30, %s181_s30 }
  0x4a   : > { %p871_p9 = scmp.ne.s32.totalorder %s181_s30, %s870_s9  ;;  %p879_p2 = scmp.lt.s32.totalorder %s870_s9, %s870_s9 }
  0x4c   : > { %p873_p12 = pnand %p871_p9, %p1093_p13  ;;  %p880_p4 = por %p879_p2, %p878_p1 }
  0x4e   : > { %p874_p0 = pneg %p873_p12 }
  0x50   : > { %p881_p8 = pnand %p880_p4, %p874_p0 }
  0x52   : > { %884 = shalt.err (!%p881_p8)
}
  0x53   : > { %744 = dma.hbm_to_vmem [thread:$0]  (!%p1077_p11), %s1301_s3, 512, %s181_s30, [#allocation9], %s994_s14, %s994_s14, %s995_s20  }
  0x54   : > { %s1166_s10 = sadd.s32 1, %s989_s18   ;;  %s29_s25 = sadd.s32 1, %s985_s17 }
  0x55   : > { %s26_s26 = ssub.s32 %s989_s18, %s1166_s10  ;;  %p36_p8 = scmp.ne.s32.totalorder %s985_s17, %s981_s16 }
  0x56   : > { %p27_p4 = scmp.eq.s32.totalorder %s26_s26, 0  ;;  %p37_p13 = scmp.eq.s32.totalorder %s989_s18, 0 }
  0x57   : > { %p756_p6 = scmp.lt.s32.totalorder %s989_s18, 2  ;;  %p1311_p3 = scmp.eq.s32.totalorder %s1047_s19, 1 }
  0x58   : > { %s1176_s12 = scalar_select %p27_p4, %s985_s17, %s29_s25  }
  0x59   : > { %p38_p10 = por %p37_p13, %p36_p8  ;;  %p1180_p5 = por %p1311_p3, %p36_p8 }
  0x5a   : > { %s194_s24 = sand.u32 1, %s985_s17   ;;  %s619_s27 = sshll.u32 %s989_s18, 7 }
  0x5b   : > { %s618_s30 = sshll.u32 %s194_s24, 3  ;;  %s1189_s29 = scalar_lea.hbm %s1298_s0, %s619_s27 }
  0x5c   : > { %s198_s5 = scalar_lea.vmem [#allocation2], %s618_s30  ;;  %p1191_p11 = pnand %p756_p6, %p38_p10 }
  0x5d   : > { %s205_s6 = sshll.u32 %s198_s5, 4  ;;  %s195_s8 = scalar_lea.sflag [#allocation3], %s194_s24  ;;  %s1195_s6 = int_to_ptr.vmem [resolvable:$true] %s205_s6 }
  0x5e   : > { %s885_s9 = scalar_lea.hbm %s1189_s29, 128  ;;  %p887_p9 = pneg %p1191_p11 }
  0x5f   : > { %p886_p7 = scmp.ne.s32.totalorder %s1189_s29, %s885_s9  ;;  %s890_s26 = scalar_lea.hbm %s1298_s0, 256 }
  0x60   : > { %p891_p1 = scmp.lt.u32.totalorder %s1189_s29, %s1298_s0  ;;  %p892_p2 = scmp.lt.u32.totalorder %s890_s26, %s885_s9 }
  0x61   : > { %p888_p12 = pnand %p887_p9, %p886_p7  ;;  %p894_p8 = scmp.lt.u32.totalorder %s885_s9, %s1189_s29 }
  0x62   : > { %p893_p4 = por %p892_p2, %p891_p1 }
  0x63   : > { %p889_p0 = pneg %p888_p12 }
  0x64   : > { %p895_p13 = por %p894_p8, %p893_p4 }
  0x66   : > { %p896_p6 = pnand %p895_p13, %p889_p0 }
  0x68   : > { %899 = shalt.err (!%p896_p6)
}
  0x69   : > { %s900_s24 = scalar_lea.vmem %s1195_s6, 128  ;;  %s996_s30 = smov [#allocation2]  }
  0x6a   : > { %p901_p10 = scmp.ne.s32.totalorder %s1195_s6, %s900_s24  ;;  %s905_s14 = sshll.u32 %s996_s30, 4  ;;  %s906_s14 = int_to_ptr.vmem [resolvable:$false] %s905_s14 }
  0x6b   : > { %s907_s20 = scalar_lea.vmem %s906_s14, 256  ;;  %p908_p12 = scmp.lt.s32.totalorder %s1195_s6, %s906_s14 }
  0x6c   : > { %p903_p3 = pnand %p901_p10, %p887_p9  ;;  %p909_p1 = scmp.lt.s32.totalorder %s907_s20, %s900_s24 }
  0x6e   : > { %p904_p7 = pneg %p903_p3  ;;  %p910_p2 = por %p909_p1, %p908_p12 }
  0x70   : > { %p911_p4 = pnand %p910_p2, %p904_p7 }
  0x72   : > { %914 = shalt.err (!%p911_p4)
}
  0x73   : > { %748 = dma.hbm_to_vmem [thread:$0]  (!%p1191_p11), %s1189_s29, 128, %s1195_s6, %s195_s8  }
  0x74   : > { %p1314_p0 = scmp.ne.s32.totalorder %s1308_s23, 0 }
  0x75   : > { %s1225_s5 = sand.u32 (!%p1314_p0), 1, %s981_s16   ;;  %p1315_p9 = scmp.ne.s32.totalorder (!%p1314_p0), %s1306_s21, 0 }
  0x76   : > { %214 = sbr.rel (%p1314_p0) target bundleno = 592 (0x250), region = 36  ;;  %s621_s9 = sshll.u32 (!%p1314_p0), %s1225_s5, 3 }
  0x77   : > { %s217_s28 = scalar_lea.sflag (!%p1314_p0), [#allocation3], %s1225_s5  ;;  %s1229_s11 = scalar_lea.vmem (!%p1314_p0), [#allocation2], %s621_s9 }
  0x7d   : > { %960 = dma.done.wait (%p1315_p9), %s217_s28, 128  }
  0x7e   : > { %962 = vsyncadd (%p1315_p9), %s217_s28, 4294967168  ;;  %p1316_p11 = scmp.eq.s32.totalorder %s1047_s19, 0 }
  0x80   : > { %964 = dma.done.wait (%p1316_p11), [#allocation6], 1536   ;;  %p1317_p8 = pmov %p1316_p11 }
  0x82   : > { %966 = vsyncadd (%p1317_p8), [#allocation6], 4294965760  ;;  %p1318_p13 = pmov %p1317_p8 }
  0x83   : > { %p1319_p6 = pmov %p1317_p8 }
  0x84   : > { %968 = dma.done.wait (%p1318_p13), [#allocation9], 512  }
  0x85   : > { %970 = vsyncadd (%p1319_p6), [#allocation9], 4294966784  ;;  %v997_v0 = vmov 0.0|0.0   ;;  %vm998_vm0 = vmmov 0   ;;  %v999_v1 = vmov 0.0   ;;  %v258_v2 = vld [vmem:[#allocation5] sm:$0xff] }
  0x86   : > { %694 = vmatprep.subr.bf16.mxu0 %v997_v0  ;;  %661 = vmatprep.mubr.msk.f32.mxu0 %vm998_vm0, %v999_v1  ;;  %v259_v3 = vld [vmem:[#allocation5 + $0x8] sm:$0xff]  ;;  %v260_v4 = vld [vmem:[#allocation5 + $0x10] sm:$0xff]  ;;  %v261_v6 = vld [vmem:[#allocation5 + $0x18] sm:$0xff]  ;;  %vm262_vm1 = vcmask 261120   ;;  %vm421_vm2 = vcmask 523264   ;;  %s625_s21 = sshll.u32 %s1225_s5, 2 }
  0x87   : > { %706 = vmatprep.subr.bf16.mxu1 %v997_v0  ;;  %691 = vmatprep.mubr.msk.f32.mxu1 %vm998_vm0, %v999_v1  ;;  %v695_v5 = vpack.c.bf16 %v259_v3, %v258_v2  ;;  %v339_v7 = vld [vmem:[#allocation7] sm:$0xff]  ;;  %v340_v8 = vld [vmem:[#allocation7 + $0x8] sm:$0xff]  ;;  %v341_v9 = vld [vmem:[#allocation7 + $0x10] sm:$0xff]  ;;  %v698_v11 = vpack.c.bf16 %v261_v6, %v260_v4  ;;  %s631_s23 = sshll.u32 %s1047_s19, 6  ;;  %s256_s29 = scalar_lea.vmem [#allocation10], %s625_s21 }
  0x88   : > { %v342_v10 = vld [vmem:[#allocation7 + $0x18] sm:$0xff]  ;;  %v707_v12 = vpack.c.bf16 %v340_v8, %v339_v7  ;;  %v347_v13 = vld [vmem:[#allocation8] sm:$0xff]  ;;  %v348_v14 = vld [vmem:[#allocation8 + $0x8] sm:$0xff]  ;;  %s513_s6 = sshll.u32 %s256_s29, 4  ;;  %s1254_s26 = scalar_lea.hbm %s1302_s4, %s631_s23  ;;  %s1256_s6 = int_to_ptr.vmem [resolvable:$true] %s513_s6 }
  0x89   : > { %696 = vmatpush3.bf16.msra.mxu0 %v695_v5  ;;  %v710_v15 = vpack.c.bf16 %v342_v10, %v341_v9  ;;  %v343_v16 = vld [vmem:[#allocation7 + $0x20] sm:$0xff]  ;;  %v344_v17 = vld [vmem:[#allocation7 + $0x28] sm:$0xff]  ;;  %v257_v18 = vld [vmem:[%s1229_s11] sm:$0xff]  ;;  %v701_v19 = vpack.c.bf16 %v348_v14, %v347_v13  ;;  %s500_s25 = scalar_lea.sflag [#allocation4], %s1225_s5  ;;  %s915_s27 = scalar_lea.vmem %s1256_s6, 64 }
  0x8a   : > { %697 = vmatprep.subr.bf16.mxu0 %v997_v0  ;;  %708 = vmatpush3.bf16.msra.mxu1 %v707_v12  ;;  %v349_v20 = vld [vmem:[#allocation8 + $0x10] sm:$0xff]  ;;  %v350_v21 = vld [vmem:[#allocation8 + $0x18] sm:$0xff]  ;;  %v713_v22 = vpack.c.bf16 %v344_v17, %v343_v16  ;;  %p916_p10 = scmp.ne.s32.totalorder %s1256_s6, %s915_s27  ;;  %s1000_s19 = smov [#allocation10]  }
  0x8b   : > { %709 = vmatprep.subr.bf16.mxu1 %v997_v0  ;;  %v704_v23 = vpack.c.bf16 %v350_v21, %v349_v20  ;;  %v345_v24 = vld [vmem:[#allocation7 + $0x30] sm:$0xff]  ;;  %v346_v25 = vld [vmem:[#allocation7 + $0x38] sm:$0xff]  ;;  %s919_s24 = sshll.u32 %s1000_s19, 4  ;;  %s920_s24 = int_to_ptr.vmem [resolvable:$false] %s919_s24 }
  0x8c   : > { %v716_v26 = vpack.c.bf16 %v346_v25, %v345_v24  ;;  %p917_p3 = pnand %p916_p10, %p1180_p5  ;;  %s921_s30 = scalar_lea.vmem %s920_s24, 128 }
  0x8d   : > { %699 = vmatpush3.bf16.msra.mxu0 %v698_v11  ;;  %p922_p12 = scmp.lt.s32.totalorder %s1256_s6, %s920_s24  ;;  %p923_p1 = scmp.lt.s32.totalorder %s921_s30, %s915_s27 }
  0x8e   : > { %700 = vmatprep.subr.bf16.mxu0 %v997_v0  ;;  %711 = vmatpush3.bf16.msra.mxu1 %v710_v15  ;;  %p918_p7 = pneg %p917_p3 }
  0x8f   : > { %712 = vmatprep.subr.bf16.mxu1 %v997_v0  ;;  %p924_p2 = por %p923_p1, %p922_p12 }
  0x90   : > { %662 = vmatmul.mubr.msk.f32.vlgmr.msra.gmra.mrb[0].mxu0 %vm262_vm1, %v257_v18 }
  0x91   : > { %702 = vmatpush3.bf16.msra.mxu0 %v701_v19  ;;  %672 = vmatprep.mubr.msk.f32.mxu0 %vm998_vm0, %v999_v1  ;;  %p925_p4 = pnand %p924_p2, %p918_p7 }
  0x92   : > { %703 = vmatprep.subr.bf16.mxu0 %v997_v0  ;;  %714 = vmatpush3.bf16.msra.mxu1 %v713_v22 }
  0x93   : > { %715 = vmatprep.subr.bf16.mxu1 %v997_v0 }
  0x95   : > { %705 = vmatpush3.bf16.msra.mxu0 %v704_v23 }
  0x96   : > { %717 = vmatpush3.bf16.msra.mxu1 %v716_v26 }
  0x98   : > { %673 = vmatmul.mubr.msk.f32.vlgmr.msra.gmra.mrb[2].mxu0 %vm262_vm1, %v257_v18 }
 0x163   : > { %v332_v27 = vpop.f32.mrb[0].mxu0 }
 0x164   : > { %vm336_vm3 = vcmp.eq.f32.partialorder %v332_v27, 0.0  ;;  %v663_v28 = vpop.f32.mrb[1].mxu0 }
 0x165   : > { %v627_v29 = vsel %vm336_vm3, 1.0, %v999_v1 }
 0x166   : > { %692 = vmatmul.mubr.msk.f32.vlgmr.msra.gmra.mrb[0].mxu1 %vm421_vm2, %v627_v29 }
 0x16b   : > { %v417_v30 = vpop.f32.mrb[2].mxu0 }
 0x16c   : > { %v674_v31 = vpop.f32.mrb[3].mxu0 }
 0x239   : > { %v491_v32 = vpop.f32.mrb[0].mxu1 }
 0x23a   : > { %v492_v33 = vadd.f32 %v491_v32, %v417_v30  ;;  %v693_v34 = vpop.f32.mrb[1].mxu1 }
 0x23c   : > { %v495_v35 = vmul.f32 0.01, %v492_v33 }
 0x23e   : > { %v496_v36 = vmax.f32 %v492_v33, %v495_v35 }
 0x240   : > { %v497_v37 = vpack.c.bf16 %v496_v36, %v496_v36 }
 0x242   : > { %498 = vst [vmem:[%s256_s29] sm:$0xf] %v497_v37 }
 0x243   : > { %928 = shalt.err (!%p925_p4)
}
 0x244   : > { %s929_s14 = scalar_lea.hbm %s1254_s26, 64  ;;  %s933_s9 = scalar_lea.hbm %s1302_s4, 128 }
 0x245   : > { %p930_p0 = scmp.ne.s32.totalorder %s1254_s26, %s929_s14  ;;  %p934_p8 = scmp.lt.u32.totalorder %s1254_s26, %s1302_s4 }
 0x246   : > { %p935_p13 = scmp.lt.u32.totalorder %s933_s9, %s929_s14  ;;  %p937_p10 = scmp.lt.u32.totalorder %s929_s14, %s1254_s26 }
 0x247   : > { %p931_p9 = pnand %p930_p0, %p1180_p5 }
 0x248   : > { %p936_p6 = por %p935_p13, %p934_p8 }
 0x249   : > { %p932_p11 = pneg %p931_p9 }
 0x24a   : > { %p938_p3 = por %p937_p10, %p936_p6 }
 0x24c   : > { %p939_p7 = pnand %p938_p3, %p932_p11 }
 0x24e   : > { %942 = shalt.err (!%p939_p7)
}
 0x24f   : > { %733 = dma.vmem_to_hbm [thread:$0]  (%p1180_p5), %s1256_s6, 64, %s1254_s26, %s500_s25  }
 0x250 PF: > { %s525_s21 = sand.u32 1, %s977_s15   ;;  %p1320_p12 = scmp.ne.s32.totalorder %s1307_s22, 0 }
 0x251   : > { %p1321_p1 = scmp.ge.s32.totalorder %s989_s18, 2  ;;  %s526_s23 = scalar_lea.sflag [#allocation4], %s525_s21 }
 0x253   : > { %p750_p2 = pnand %p1321_p1, %p1320_p12 }
 0x255   : > { %972 = dma.done.wait (!%p750_p2), %s526_s23, 64  }
 0x256   : > { %974 = vsyncadd (!%p750_p2), %s526_s23, 4294967232  ;;  %p19_p4 = scmp.ge.s32.totalorder %s1166_s10, 4   ;;  %s1322_s15 = smov %s981_s16 }
 0x257   : > { %s1323_s16 = smov %s985_s17  ;;  %s1324_s17 = smov %s1176_s12 }
 0x258   : > { %s1325_s18 = smov %s1166_s10  ;;  %21 = sbr.rel (!%p19_p4) target bundleno = 7 (0x7), region = 93 }
 0x25f   :  { %531 = vsyncpa [#allocation3], 1 }
 0x260   :  { %533 = vsyncpa [#allocation3 + $0x1], 1 }
 0x261   :  { %534 = vsyncpa [#allocation6], 1 }
 0x262   :  { %535 = vsyncpa [#allocation9], 1 }
 0x263   :  { %536 = vsyncpa [#allocation4], 1 }
 0x264   :  { %538 = vsyncpa [#allocation4 + $0x1], 1 }

</bundles_post_ra>
